<compile_context>
chip_gen: v7x
topology: tpu7x:2x2x1
jax: 0.10.0
libtpu: 0.0.40
codegen_flags: <defaults>
</compile_context>

<pallas_src>
import itertools
import numpy as np
import jax
import jax.numpy as jnp
from jax.experimental import pallas as pl
from jax.experimental.pallas import tpu as pltpu

_LANE = 128


# ---------------------------------------------------------------------------
# Deterministic parameter construction (pure numpy, mirrors Link.__init__)
# ---------------------------------------------------------------------------
def build_link_params(n_states, transition_table, rate_inverse, code_gm):
    # states_to_edges mask: [n_states, 2*n_states]  (one-hot columns)
    tt_flat = transition_table.reshape(1, -1)
    states_to_edges = np.concatenate(
        [(tt_flat == i).astype(np.float32) for i in range(n_states)], axis=0)

    # all_llrs_combinations: (rate_inverse, 2**rate_inverse)
    binary_combinations = np.array(list(itertools.product(range(2), repeat=rate_inverse)))
    bpsk_mapped = (-1.0) ** binary_combinations
    all_llrs_combinations_mat = np.fliplr(np.flipud(bpsk_mapped)).copy()
    all_llrs_combinations = all_llrs_combinations_mat.T

    # llrs_combinations_to_edges: (2**rate_inverse, 2*n_states)
    memory = int(np.log2(n_states))
    generator_polys = code_gm[0, :rate_inverse * (memory + 1)]
    generator_polys = generator_polys.reshape(memory + 1, -1).T
    generator_polys = np.fliplr(generator_polys)
    states_binary_combinations = np.array(
        list(itertools.product(range(2), repeat=memory))).repeat(2, axis=0)
    input_bits = np.tile(np.array([1, 0]), n_states).reshape(-1, 1)
    edge_bits = np.concatenate([input_bits, states_binary_combinations], axis=1)
    bits_outputs_on_edges = np.matmul(edge_bits, generator_polys.T) % 2
    llr_outputs_on_edges = (-1.0) ** bits_outputs_on_edges
    llrs_combinations_to_edges = np.zeros([2 ** rate_inverse, 2 * n_states])
    for row_ind in range(llrs_combinations_to_edges.shape[0]):
        llrs_combinations_to_edges[row_ind] = np.equal(
            llr_outputs_on_edges, all_llrs_combinations_mat[row_ind]).all(1)

    # llrs_to_edges: (rate_inverse, 2*n_states), entries in {-1, +1}
    llrs_to_edges = (all_llrs_combinations @ llrs_combinations_to_edges).astype(np.float32)

    # forward uses (states_to_edges * states_to_edges_mask); mask is 0/1 so this
    # equals the mask itself, but reproduce the product explicitly.
    w_state = (states_to_edges * states_to_edges).astype(np.float32)
    return w_state, llrs_to_edges


# ---------------------------------------------------------------------------
# Pallas kernel: Viterbi ACS, lane-dense over batch, weights baked as constants
# ---------------------------------------------------------------------------
def _lincomb(ref, col):
    """sum_k col[k] * ref[k, :], unrolled at trace time.

    Zero coefficients are skipped, +/-1 coefficients become pure adds/subs, so for
    the one-hot / +/-1 Link weights this is a static row-select plus a few VPU ops.
    Rows stay 2-D [1, b_tile] (lane-dense)."""
    acc = None
    for k, c in enumerate(np.asarray(col).reshape(-1).tolist()):
        c = float(c)
        if c == 0.0:
            continue
        row = ref[pl.ds(k, 1), :]                       # [1, b_tile]
        if c == 1.0:
            term = row
        elif c == -1.0:
            term = -row
        else:
            term = c * row
        acc = term if acc is None else acc + term
    if acc is None:
        acc = jnp.zeros_like(ref[pl.ds(0, 1), :])
    return acc


def _make_acs_kernel(w_state, w_llr, n_states):
    """Build the kernel body with the (constant) weights baked in."""

    def kernel(ip_ref, llr_ref, vals_ref, idx_ref):
        # ip_ref : [n_states, b_tile]      path metrics, batch on lanes
        # llr_ref: [rate_inverse, b_tile]  edge LLRs,   batch on lanes
        for j in range(n_states):
            a = _lincomb(ip_ref, w_state[:, 2 * j]) + _lincomb(llr_ref, w_llr[:, 2 * j])
            b = _lincomb(ip_ref, w_state[:, 2 * j + 1]) + _lincomb(llr_ref, w_llr[:, 2 * j + 1])
            vals_ref[pl.ds(j, 1), :] = jnp.maximum(a, b)
            # torch.max(dim=2) returns the first maximal index on ties
            # -> index 1 only if the odd edge is strictly greater.
            idx_ref[pl.ds(j, 1), :] = (b > a).astype(jnp.int32)

    return kernel


def make_link_forward(n_states, transition_table, rate_inverse, code_gm,
                      max_batch_tile=512):
    """Returns a jitted forward(in_prob, llrs) -> (max_values, argmax_indices)."""
    w_state, w_llr = build_link_params(n_states, transition_table, rate_inverse, code_gm)
    kernel = _make_acs_kernel(w_state, w_llr, n_states)

    def forward(in_prob, llrs):
        batch = in_prob.shape[0]

        # Lane-dense layout: batch on the last (lane) axis, padded to 128.
        bp = max(_LANE, ((batch + _LANE - 1) // _LANE) * _LANE)
        b_tile = next(t for t in (max_batch_tile, 256, _LANE) if bp % t == 0)

        ip_t = jnp.pad(in_prob.astype(jnp.float32).T, ((0, 0), (0, bp - batch)))
        llr_t = jnp.pad(llrs.astype(jnp.float32).T, ((0, 0), (0, bp - batch)))

        grid = (bp // b_tile,)
        vals_t, idx_t = pl.pallas_call(
            kernel,
            grid=grid,
            in_specs=[
                pl.BlockSpec((n_states, b_tile), lambda i: (0, i)),
                pl.BlockSpec((rate_inverse, b_tile), lambda i: (0, i)),
            ],
            out_specs=(
                pl.BlockSpec((n_states, b_tile), lambda i: (0, i)),
                pl.BlockSpec((n_states, b_tile), lambda i: (0, i)),
            ),
            out_shape=(
                jax.ShapeDtypeStruct((n_states, bp), jnp.float32),
                jax.ShapeDtypeStruct((n_states, bp), jnp.int32),
            ),
            compiler_params=pltpu.CompilerParams(
                dimension_semantics=("parallel",)),  # 2nd TC on v7x; no-op elsewhere
        )(ip_t, llr_t)

        # Back to the module's [batch, n_states] layout (wrapper layout plumbing).
        return vals_t.T[:batch], idx_t.T[:batch]

    return jax.jit(forward)


if __name__ == "__main__":
    # Rate-1/2 convolutional code, memory 2 (generators 7, 5 octal) -> 4 states.
    n_states = 4
    rate_inverse = 2
    code_gm = np.array([[1, 1, 1, 0, 1, 1]], dtype=np.int64)
    # transition_table[s] = the two predecessor states whose edges enter state s
    transition_table = np.array([[0, 1], [2, 3], [0, 1], [2, 3]], dtype=np.int64)

    fwd = make_link_forward(n_states, transition_table, rate_inverse, code_gm)

    # Dense weights (for the pure-JAX reference only).
    w_state_np, w_llr_np = build_link_params(n_states, transition_table,
                                             rate_inverse, code_gm)
    w_state = jnp.asarray(w_state_np)   # [n_states, 2*n_states]
    w_llr = jnp.asarray(w_llr_np)       # [rate_inverse, 2*n_states]

    key = jax.random.PRNGKey(0)
    for batch in (8, 640):              # single-tile and multi-tile grid paths
        key, k1, k2 = jax.random.split(key, 3)
        in_prob = jax.random.normal(k1, (batch, n_states), dtype=jnp.float32)
        llrs = jax.random.normal(k2, (batch, rate_inverse), dtype=jnp.float32)

        vals, idx = fwd(in_prob, llrs)
        jax.block_until_ready((vals, idx))

        # Pure-JAX reference of the original forward (matmul -> reshape -> max/argmax)
        edges = in_prob @ w_state + llrs @ w_llr
        r = edges.reshape(batch, n_states, 2)
        ref_vals = r.max(axis=-1)
        ref_idx = r.argmax(axis=-1).astype(jnp.int32)

        assert vals.shape == (batch, n_states) and idx.shape == (batch, n_states)
        assert jnp.allclose(vals, ref_vals, atol=1e-5), "max values mismatch"
        assert jnp.array_equal(idx, ref_idx), "argmax indices mismatch"

    print("KERNEL_OK")
</pallas_src>

<mosaic_0001>
module attributes {stable_mosaic.version = 11 : i64} {
  func.func @kernel(%arg0: i32, %arg1: memref<4x128xf32, #tpu.memory_space<vmem>>, %arg2: memref<2x128xf32, #tpu.memory_space<vmem>>, %arg3: memref<4x128xf32, #tpu.memory_space<vmem>>, %arg4: memref<4x128xi32, #tpu.memory_space<vmem>>) attributes {dimension_semantics = [#tpu.dimension_semantics<parallel>], iteration_bounds = array<i64: 1>, scalar_prefetch = 0 : i64, scratch_operands = 0 : i64, tpu.core_type = #tpu.core_type<tc>, window_params = [{transform_indices = @transform_0, window_bounds = array<i64: 4, 128>}, {transform_indices = @transform_1, window_bounds = array<i64: 2, 128>}, {transform_indices = @transform_2, window_bounds = array<i64: 4, 128>}, {transform_indices = @transform_3, window_bounds = array<i64: 4, 128>}]} {
    %c0 = arith.constant 0 : index
    %c0_0 = arith.constant 0 : index
    %0 = vector.load %arg1[%c0, %c0_0] : memref<4x128xf32, #tpu.memory_space<vmem>>, vector<1x128xf32>
    %c0_1 = arith.constant 0 : index
    %c0_2 = arith.constant 0 : index
    %1 = vector.load %arg2[%c0_1, %c0_2] : memref<2x128xf32, #tpu.memory_space<vmem>>, vector<1x128xf32>
    %cst = arith.constant 0.000000e+00 : f32
    %2 = vector.broadcast %cst : f32 to vector<1x128xf32>
    %3 = arith.subf %2, %1 : vector<1x128xf32>
    %c1 = arith.constant 1 : index
    %c0_3 = arith.constant 0 : index
    %4 = vector.load %arg2[%c1, %c0_3] : memref<2x128xf32, #tpu.memory_space<vmem>>, vector<1x128xf32>
    %cst_4 = arith.constant 0.000000e+00 : f32
    %5 = vector.broadcast %cst_4 : f32 to vector<1x128xf32>
    %6 = arith.subf %5, %4 : vector<1x128xf32>
    %7 = arith.addf %3, %6 : vector<1x128xf32>
    %8 = arith.addf %0, %7 : vector<1x128xf32>
    %c1_5 = arith.constant 1 : index
    %c0_6 = arith.constant 0 : index
    %9 = vector.load %arg1[%c1_5, %c0_6] : memref<4x128xf32, #tpu.memory_space<vmem>>, vector<1x128xf32>
    %c0_7 = arith.constant 0 : index
    %c0_8 = arith.constant 0 : index
    %10 = vector.load %arg2[%c0_7, %c0_8] : memref<2x128xf32, #tpu.memory_space<vmem>>, vector<1x128xf32>
    %c1_9 = arith.constant 1 : index
    %c0_10 = arith.constant 0 : index
    %11 = vector.load %arg2[%c1_9, %c0_10] : memref<2x128xf32, #tpu.memory_space<vmem>>, vector<1x128xf32>
    %12 = arith.addf %10, %11 : vector<1x128xf32>
    %13 = arith.addf %9, %12 : vector<1x128xf32>
    %14 = arith.maximumf %8, %13 : vector<1x128xf32>
    %c0_11 = arith.constant 0 : index
    %c0_12 = arith.constant 0 : index
    %15 = vector.load %arg3[%c0_11, %c0_12] : memref<4x128xf32, #tpu.memory_space<vmem>>, vector<1x128xf32>
    tpu.vector_store %arg3[%c0_11, %c0_12], %14 {strides = array<i32>} : memref<4x128xf32, #tpu.memory_space<vmem>>, vector<1x128xf32>,
    %16 = arith.cmpf ogt, %13, %8 : vector<1x128xf32>
    %17 = arith.extui %16 : vector<1x128xi1> to vector<1x128xi32>
    %c0_13 = arith.constant 0 : index
    %c0_14 = arith.constant 0 : index
    %18 = vector.load %arg4[%c0_13, %c0_14] : memref<4x128xi32, #tpu.memory_space<vmem>>, vector<1x128xi32>
    tpu.vector_store %arg4[%c0_13, %c0_14], %17 {strides = array<i32>} : memref<4x128xi32, #tpu.memory_space<vmem>>, vector<1x128xi32>,
    %c2 = arith.constant 2 : index
    %c0_15 = arith.constant 0 : index
    %19 = vector.load %arg1[%c2, %c0_15] : memref<4x128xf32, #tpu.memory_space<vmem>>, vector<1x128xf32>
    %c0_16 = arith.constant 0 : index
    %c0_17 = arith.constant 0 : index
    %20 = vector.load %arg2[%c0_16, %c0_17] : memref<2x128xf32, #tpu.memory_space<vmem>>, vector<1x128xf32>
    %c1_18 = arith.constant 1 : index
    %c0_19 = arith.constant 0 : index
    %21 = vector.load %arg2[%c1_18, %c0_19] : memref<2x128xf32, #tpu.memory_space<vmem>>, vector<1x128xf32>
    %22 = arith.addf %20, %21 : vector<1x128xf32>
    %23 = arith.addf %19, %22 : vector<1x128xf32>
    %c3 = arith.constant 3 : index
    %c0_20 = arith.constant 0 : index
    %24 = vector.load %arg1[%c3, %c0_20] : memref<4x128xf32, #tpu.memory_space<vmem>>, vector<1x128xf32>
    %c0_21 = arith.constant 0 : index
    %c0_22 = arith.constant 0 : index
    %25 = vector.load %arg2[%c0_21, %c0_22] : memref<2x128xf32, #tpu.memory_space<vmem>>, vector<1x128xf32>
    %cst_23 = arith.constant 0.000000e+00 : f32
    %26 = vector.broadcast %cst_23 : f32 to vector<1x128xf32>
    %27 = arith.subf %26, %25 : vector<1x128xf32>
    %c1_24 = arith.constant 1 : index
    %c0_25 = arith.constant 0 : index
    %28 = vector.load %arg2[%c1_24, %c0_25] : memref<2x128xf32, #tpu.memory_space<vmem>>, vector<1x128xf32>
    %cst_26 = arith.constant 0.000000e+00 : f32
    %29 = vector.broadcast %cst_26 : f32 to vector<1x128xf32>
    %30 = arith.subf %29, %28 : vector<1x128xf32>
    %31 = arith.addf %27, %30 : vector<1x128xf32>
    %32 = arith.addf %24, %31 : vector<1x128xf32>
    %33 = arith.maximumf %23, %32 : vector<1x128xf32>
    %c1_27 = arith.constant 1 : index
    %c0_28 = arith.constant 0 : index
    %34 = vector.load %arg3[%c1_27, %c0_28] : memref<4x128xf32, #tpu.memory_space<vmem>>, vector<1x128xf32>
    tpu.vector_store %arg3[%c1_27, %c0_28], %33 {strides = array<i32>} : memref<4x128xf32, #tpu.memory_space<vmem>>, vector<1x128xf32>,
    %35 = arith.cmpf ogt, %32, %23 : vector<1x128xf32>
    %36 = arith.extui %35 : vector<1x128xi1> to vector<1x128xi32>
    %c1_29 = arith.constant 1 : index
    %c0_30 = arith.constant 0 : index
    %37 = vector.load %arg4[%c1_29, %c0_30] : memref<4x128xi32, #tpu.memory_space<vmem>>, vector<1x128xi32>
    tpu.vector_store %arg4[%c1_29, %c0_30], %36 {strides = array<i32>} : memref<4x128xi32, #tpu.memory_space<vmem>>, vector<1x128xi32>,
    %c0_31 = arith.constant 0 : index
    %c0_32 = arith.constant 0 : index
    %38 = vector.load %arg1[%c0_31, %c0_32] : memref<4x128xf32, #tpu.memory_space<vmem>>, vector<1x128xf32>
    %c0_33 = arith.constant 0 : index
    %c0_34 = arith.constant 0 : index
    %39 = vector.load %arg2[%c0_33, %c0_34] : memref<2x128xf32, #tpu.memory_space<vmem>>, vector<1x128xf32>
    %c1_35 = arith.constant 1 : index
    %c0_36 = arith.constant 0 : index
    %40 = vector.load %arg2[%c1_35, %c0_36] : memref<2x128xf32, #tpu.memory_space<vmem>>, vector<1x128xf32>
    %cst_37 = arith.constant 0.000000e+00 : f32
    %41 = vector.broadcast %cst_37 : f32 to vector<1x128xf32>
    %42 = arith.subf %41, %40 : vector<1x128xf32>
    %43 = arith.addf %39, %42 : vector<1x128xf32>
    %44 = arith.addf %38, %43 : vector<1x128xf32>
    %c1_38 = arith.constant 1 : index
    %c0_39 = arith.constant 0 : index
    %45 = vector.load %arg1[%c1_38, %c0_39] : memref<4x128xf32, #tpu.memory_space<vmem>>, vector<1x128xf32>
    %c0_40 = arith.constant 0 : index
    %c0_41 = arith.constant 0 : index
    %46 = vector.load %arg2[%c0_40, %c0_41] : memref<2x128xf32, #tpu.memory_space<vmem>>, vector<1x128xf32>
    %cst_42 = arith.constant 0.000000e+00 : f32
    %47 = vector.broadcast %cst_42 : f32 to vector<1x128xf32>
    %48 = arith.subf %47, %46 : vector<1x128xf32>
    %c1_43 = arith.constant 1 : index
    %c0_44 = arith.constant 0 : index
    %49 = vector.load %arg2[%c1_43, %c0_44] : memref<2x128xf32, #tpu.memory_space<vmem>>, vector<1x128xf32>
    %50 = arith.addf %48, %49 : vector<1x128xf32>
    %51 = arith.addf %45, %50 : vector<1x128xf32>
    %52 = arith.maximumf %44, %51 : vector<1x128xf32>
    %c2_45 = arith.constant 2 : index
    %c0_46 = arith.constant 0 : index
    %53 = vector.load %arg3[%c2_45, %c0_46] : memref<4x128xf32, #tpu.memory_space<vmem>>, vector<1x128xf32>
    tpu.vector_store %arg3[%c2_45, %c0_46], %52 {strides = array<i32>} : memref<4x128xf32, #tpu.memory_space<vmem>>, vector<1x128xf32>,
    %54 = arith.cmpf ogt, %51, %44 : vector<1x128xf32>
    %55 = arith.extui %54 : vector<1x128xi1> to vector<1x128xi32>
    %c2_47 = arith.constant 2 : index
    %c0_48 = arith.constant 0 : index
    %56 = vector.load %arg4[%c2_47, %c0_48] : memref<4x128xi32, #tpu.memory_space<vmem>>, vector<1x128xi32>
    tpu.vector_store %arg4[%c2_47, %c0_48], %55 {strides = array<i32>} : memref<4x128xi32, #tpu.memory_space<vmem>>, vector<1x128xi32>,
    %c2_49 = arith.constant 2 : index
    %c0_50 = arith.constant 0 : index
    %57 = vector.load %arg1[%c2_49, %c0_50] : memref<4x128xf32, #tpu.memory_space<vmem>>, vector<1x128xf32>
    %c0_51 = arith.constant 0 : index
    %c0_52 = arith.constant 0 : index
    %58 = vector.load %arg2[%c0_51, %c0_52] : memref<2x128xf32, #tpu.memory_space<vmem>>, vector<1x128xf32>
    %cst_53 = arith.constant 0.000000e+00 : f32
    %59 = vector.broadcast %cst_53 : f32 to vector<1x128xf32>
    %60 = arith.subf %59, %58 : vector<1x128xf32>
    %c1_54 = arith.constant 1 : index
    %c0_55 = arith.constant 0 : index
    %61 = vector.load %arg2[%c1_54, %c0_55] : memref<2x128xf32, #tpu.memory_space<vmem>>, vector<1x128xf32>
    %62 = arith.addf %60, %61 : vector<1x128xf32>
    %63 = arith.addf %57, %62 : vector<1x128xf32>
    %c3_56 = arith.constant 3 : index
    %c0_57 = arith.constant 0 : index
    %64 = vector.load %arg1[%c3_56, %c0_57] : memref<4x128xf32, #tpu.memory_space<vmem>>, vector<1x128xf32>
    %c0_58 = arith.constant 0 : index
    %c0_59 = arith.constant 0 : index
    %65 = vector.load %arg2[%c0_58, %c0_59] : memref<2x128xf32, #tpu.memory_space<vmem>>, vector<1x128xf32>
    %c1_60 = arith.constant 1 : index
    %c0_61 = arith.constant 0 : index
    %66 = vector.load %arg2[%c1_60, %c0_61] : memref<2x128xf32, #tpu.memory_space<vmem>>, vector<1x128xf32>
    %cst_62 = arith.constant 0.000000e+00 : f32
    %67 = vector.broadcast %cst_62 : f32 to vector<1x128xf32>
    %68 = arith.subf %67, %66 : vector<1x128xf32>
    %69 = arith.addf %65, %68 : vector<1x128xf32>
    %70 = arith.addf %64, %69 : vector<1x128xf32>
    %71 = arith.maximumf %63, %70 : vector<1x128xf32>
    %c3_63 = arith.constant 3 : index
    %c0_64 = arith.constant 0 : index
    %72 = vector.load %arg3[%c3_63, %c0_64] : memref<4x128xf32, #tpu.memory_space<vmem>>, vector<1x128xf32>
    tpu.vector_store %arg3[%c3_63, %c0_64], %71 {strides = array<i32>} : memref<4x128xf32, #tpu.memory_space<vmem>>, vector<1x128xf32>,
    %73 = arith.cmpf ogt, %70, %63 : vector<1x128xf32>
    %74 = arith.extui %73 : vector<1x128xi1> to vector<1x128xi32>
    %c3_65 = arith.constant 3 : index
    %c0_66 = arith.constant 0 : index
    %75 = vector.load %arg4[%c3_65, %c0_66] : memref<4x128xi32, #tpu.memory_space<vmem>>, vector<1x128xi32>
    tpu.vector_store %arg4[%c3_65, %c0_66], %74 {strides = array<i32>} : memref<4x128xi32, #tpu.memory_space<vmem>>, vector<1x128xi32>,
    return
  }
  func.func @transform_0(%arg0: i32) -> (i32, i32) {
    %c0_i32 = arith.constant 0 : i32
    %c0_i32_0 = arith.constant 0 : i32
    return %c0_i32, %arg0 : i32, i32
  }
  func.func @transform_1(%arg0: i32) -> (i32, i32) {
    %c0_i32 = arith.constant 0 : i32
    %c0_i32_0 = arith.constant 0 : i32
    return %c0_i32, %arg0 : i32, i32
  }
  func.func @transform_2(%arg0: i32) -> (i32, i32) {
    %c0_i32 = arith.constant 0 : i32
    %c0_i32_0 = arith.constant 0 : i32
    return %c0_i32, %arg0 : i32, i32
  }
  func.func @transform_3(%arg0: i32) -> (i32, i32) {
    %c0_i32 = arith.constant 0 : i32
    %c0_i32_0 = arith.constant 0 : i32
    return %c0_i32, %arg0 : i32, i32
  }
}

</mosaic_0001>

<bundles_post_ra>
// kernel: forward.1
= control target key start
LH: loop header
LB: loop body
LE: loop exit
PB: predicated region body
PF: predicated region fallthrough
CT: control target
= control target key end

     0   :  { %9 = vsyncpa [#allocation3], 0  ;;  %s249_s0 = inlined_call_operand.vmem [shape: f32[4,128], index: 0, kind: input, shape index: {}]   ;;  %s250_s1 = inlined_call_operand.vmem [shape: f32[2,128], index: 1, kind: input, shape index: {}]   ;;  %s251_s2 = inlined_call_operand.hbm [shape: f32[4,128], index: 2, kind: output, shape index: {0}]   ;;  %s252_s3 = inlined_call_operand.hbm [shape: s32[4,128], index: 3, kind: output, shape index: {1}]  }
   0x1   :  { %v16_v0 = vld [vmem:[%s250_s1] sm:$0x1]  ;;  %v18_v1 = vld [vmem:[%s250_s1 + $0x1] sm:$0x1]  ;;  %v30_v11 = vld [vmem:[%s249_s0 + $0x2] sm:$0x1] }
   0x2   :  { %v17_v2 = vsub.f32 0.0, %v16_v0  ;;  %v19_v3 = vsub.f32 0.0, %v18_v1  ;;  %v22_v4 = vld [vmem:[%s249_s0 + $0x1] sm:$0x1]  ;;  %v23_v5 = vadd.f32 %v18_v1, %v16_v0  ;;  %v15_v6 = vld [vmem:[%s249_s0] sm:$0x1] }
   0x3   :  { %v31_v7 = vld [vmem:[%s250_s1] sm:$0x1]  ;;  %v32_v8 = vld [vmem:[%s250_s1 + $0x1] sm:$0x1]  ;;  %v35_v18 = vld [vmem:[%s249_s0 + $0x3] sm:$0x1] }
   0x4   :  { %v20_v9 = vadd.f32 %v19_v3, %v17_v2  ;;  %v24_v10 = vadd.f32 %v23_v5, %v22_v4  ;;  %v33_v12 = vadd.f32 %v32_v8, %v31_v7  ;;  %v36_v13 = vsub.f32 0.0, %v31_v7  ;;  %v46_v15 = vld [vmem:[%s250_s1] sm:$0x1]  ;;  %v47_v16 = vld [vmem:[%s250_s1 + $0x1] sm:$0x1] }
   0x5   :  { %v37_v14 = vsub.f32 0.0, %v32_v8  ;;  %v45_v19 = vld [vmem:[%s249_s0] sm:$0x1]  ;;  %v48_v20 = vsub.f32 0.0, %v47_v16  ;;  %v52_v21 = vsub.f32 0.0, %v46_v15 }
   0x6   :  { %v21_v17 = vadd.f32 %v20_v9, %v15_v6  ;;  %v34_v22 = vadd.f32 %v33_v12, %v30_v11  ;;  %v51_v24 = vld [vmem:[%s249_s0 + $0x1] sm:$0x1]  ;;  %v61_v25 = vld [vmem:[%s250_s1] sm:$0x1] }
   0x7   :  { %v38_v23 = vadd.f32 %v37_v14, %v36_v13  ;;  %v63_v26 = vld [vmem:[%s250_s1 + $0x1] sm:$0x1]  ;;  %v49_v28 = vadd.f32 %v48_v20, %v46_v15  ;;  %v53_v29 = vadd.f32 %v52_v21, %v47_v16 }
   0x8   :  { %v25_v27 = vmax.f32 %v21_v17, %v24_v10  ;;  %vm27_vm0 = vcmp.gt.f32.partialorder %v24_v10, %v21_v17 }
   0x9   :  { %10 = vsyncpa [#allocation5], 0  ;;  %v154_v30 = vmov 0   ;;  %v39_v32 = vadd.f32 %v38_v23, %v35_v18  ;;  %v62_v33 = vsub.f32 0.0, %v61_v25  ;;  %v67_v34 = vsub.f32 0.0, %v63_v26  ;;  %s155_s16 = smov [#allocation2]  }
   0xa   :  { %v28_v31 = vsel %vm27_vm0, 1, %v154_v30  ;;  %26 = vst [vmem:[#allocation2] sm:$0x1] %v25_v27  ;;  %v50_v35 = vadd.f32 %v49_v28, %v45_v19  ;;  %v54_v36 = vadd.f32 %v53_v29, %v51_v24  ;;  %v60_v37 = vld [vmem:[%s249_s0 + $0x2] sm:$0x1]  ;;  %s81_s17 = sshll.u32 %s155_s16, 4  ;;  %s82_s17 = int_to_ptr.vmem [resolvable:$true] %s81_s17 }
   0xb   :  { %29 = vst [vmem:[#allocation4] sm:$0x1] %v28_v31  ;;  %v66_v38 = vld [vmem:[%s249_s0 + $0x3] sm:$0x1]  ;;  %v40_v39 = vmax.f32 %v34_v22, %v39_v32  ;;  %vm42_vm1 = vcmp.gt.f32.partialorder %v39_v32, %v34_v22  ;;  %v64_v40 = vadd.f32 %v63_v26, %v62_v33  ;;  %v68_v41 = vadd.f32 %v67_v34, %v61_v25  ;;  %s156_s18 = smov [#allocation4]   ;;  %s106_s0 = scalar_lea.vmem %s82_s17, 64 }
   0xc   :  { %v43_v42 = vsel %vm42_vm1, 1, %v154_v30  ;;  %v55_v43 = vmax.f32 %v50_v35, %v54_v36  ;;  %vm57_vm2 = vcmp.gt.f32.partialorder %v54_v36, %v50_v35  ;;  %s91_s19 = sshll.u32 %s156_s18, 4  ;;  %p107_p0 = scmp.ne.s32.totalorder %s82_s17, %s106_s0  ;;  %s92_s19 = int_to_ptr.vmem [resolvable:$true] %s91_s19 }
   0xd   :  { %41 = vst [vmem:[#allocation2 + $0x1] sm:$0x1] %v40_v39  ;;  %44 = vst [vmem:[#allocation4 + $0x1] sm:$0x1] %v43_v42  ;;  %v58_v44 = vsel %vm57_vm2, 1, %v154_v30  ;;  %v65_v45 = vadd.f32 %v64_v40, %v60_v37  ;;  %v69_v46 = vadd.f32 %v68_v41, %v66_v38  ;;  %p111_p1 = scmp.lt.s32.totalorder %s82_s17, %s82_s17  ;;  %p112_p2 = scmp.lt.s32.totalorder %s106_s0, %s106_s0 }
   0xe   :  { %56 = vst [vmem:[#allocation2 + $0x2] sm:$0x1] %v55_v43  ;;  %59 = vst [vmem:[#allocation4 + $0x2] sm:$0x1] %v58_v44 }
   0xf   :  { %v70_v47 = vmax.f32 %v65_v45, %v69_v46  ;;  %vm72_vm3 = vcmp.gt.f32.partialorder %v69_v46, %v65_v45  ;;  %p113_p3 = por %p112_p2, %p111_p1 }
  0x10   :  { %v73_v48 = vsel %vm72_vm3, 1, %v154_v30 }
  0x11   :  { %71 = vst [vmem:[#allocation2 + $0x3] sm:$0x1] %v70_v47  ;;  %74 = vst [vmem:[#allocation4 + $0x3] sm:$0x1] %v73_v48  ;;  %p114_p4 = pnand %p113_p3, %p107_p0 }
  0x13   :  { %117 = shalt.err (!%p114_p4)
}
  0x14   :  { %s118_s22 = scalar_lea.hbm %s251_s2, 64 }
  0x15   :  { %p119_p5 = scmp.ne.s32.totalorder %s251_s2, %s118_s22  ;;  %p122_p6 = scmp.lt.u32.totalorder %s118_s22, %s251_s2 }
  0x17   :  { %p124_p7 = pnand %p122_p6, %p119_p5 }
  0x19   :  { %127 = shalt.err (!%p124_p7)
}
  0x1a   :  { %84 = dma.vmem_to_hbm [thread:$0]  %s82_s17, 64, %s251_s2, [#allocation3]  }
  0x1b   :  { %s128_s29 = scalar_lea.vmem %s92_s19, 64  ;;  %p133_p9 = scmp.lt.s32.totalorder %s92_s19, %s92_s19 }
  0x1c   :  { %p129_p8 = scmp.ne.s32.totalorder %s92_s19, %s128_s29  ;;  %p134_p10 = scmp.lt.s32.totalorder %s128_s29, %s128_s29 }
  0x1e   :  { %p135_p11 = por %p134_p10, %p133_p9 }
  0x20   :  { %p136_p12 = pnand %p135_p11, %p129_p8 }
  0x22   :  { %139 = shalt.err (!%p136_p12)
}
  0x23   :  { %s140_s5 = scalar_lea.hbm %s252_s3, 64 }
  0x24   :  { %p141_p13 = scmp.ne.s32.totalorder %s252_s3, %s140_s5  ;;  %p144_p0 = scmp.lt.u32.totalorder %s140_s5, %s252_s3 }
  0x26   :  { %p146_p1 = pnand %p144_p0, %p141_p13 }
  0x28   :  { %149 = shalt.err (!%p146_p1)
}
  0x29   :  { %94 = dma.vmem_to_hbm [thread:$0]  %s92_s19, 64, %s252_s3, [#allocation5]  }
  0x2a   :  { %150 = dma.done.wait [#allocation3], 64  }
  0x2b   :  { %151 = vsyncadd [#allocation3], 4294967232 }
  0x2c   :  { %152 = dma.done.wait [#allocation5], 64  }
  0x2d   :  { %153 = vsyncadd [#allocation5], 4294967232 }
  0x2e   :  { %101 = vsyncpa [#allocation3], 1 }
  0x2f   :  { %102 = vsyncpa [#allocation5], 1 }

</bundles_post_ra>
